<compile_context>
chip_gen: v6e
topology: v6e:2x2x1
jax: 0.10.0
libtpu: 0.0.40
codegen_flags: <defaults>
</compile_context>

<pallas_src>
import functools

import jax
import jax.numpy as jnp
from jax import lax
from jax.experimental import pallas as pl
from jax.experimental.pallas import tpu as pltpu

_LANE = 128
_SUBLANE = 8
_FALLBACK_ELEMS = 32768            # below ~128 KiB f32, a fused XLA reduction wins
_VMEM_INFLIGHT_BUDGET = 12 << 20   # target bytes for double-buffered input blocks


# --------------------------- shared loss formulas --------------------------- #
def _elementwise_loss(p, t, task_type, huber_delta, quantile_tau):
    """Per-element loss in f32.  Used by both the kernel body and the JAX paths."""
    if task_type in ("classification", "multi_label"):
        # Numerically stable BCE-with-logits (F.binary_cross_entropy_with_logits).
        # NOTE(v7x): two EUP pushes/elem (exp + log1p) make this task EUP-bound
        # there rather than HBM-bound; keep all other VPU work minimal.
        return jnp.maximum(p, 0.0) - p * t + jnp.log1p(jnp.exp(-jnp.abs(p)))
    if task_type == "huber":
        d = jnp.abs(p - t)
        if huber_delta <= 0.0:
            return d                      # torch smooth_l1_loss(beta=0) == pure L1
        return jnp.where(d < huber_delta, 0.5 * d * d / huber_delta,
                         d - 0.5 * huber_delta)
    if task_type == "quantile":
        diff = t - p
        return jnp.maximum(quantile_tau * diff, (quantile_tau - 1.0) * diff)
    # 'regression', 'sequence' and unknown types -> MSE (matches reference fallback)
    d = p - t
    return d * d


# ------------------------------ Pallas kernel ------------------------------- #
def _make_loss_kernel(task_type, huber_delta, quantile_tau,
                      has_w1, has_w2, need_wsum,
                      block_rows, rows_total, n_row_blocks, steps_per_core,
                      two_axis, may_overrun):
    """sum(loss * w1 * w2) (and optionally sum(w1)) over lane-dense (rows, 128) data."""
    tail_rows = rows_total - (n_row_blocks - 1) * block_rows
    tail_partial = tail_rows != block_rows

    def kernel(*refs):
        idx = 0
        p_ref = refs[idx]; idx += 1
        t_ref = refs[idx]; idx += 1
        w1_ref = None
        w2_ref = None
        if has_w1:
            w1_ref = refs[idx]; idx += 1
        if has_w2:
            w2_ref = refs[idx]; idx += 1
        loss_ref = refs[idx]; idx += 1
        wsum_ref = None
        if need_wsum:
            wsum_ref = refs[idx]; idx += 1
        acc_ref = refs[idx]; idx += 1
        wacc_ref = refs[idx] if need_wsum else None

        if two_axis:
            c = pl.program_id(0)
            i = pl.program_id(1)
            nsteps = pl.num_programs(1)
            logical_blk = c * steps_per_core + i
        else:
            i = pl.program_id(0)
            nsteps = pl.num_programs(0)
            logical_blk = i

        @pl.when(i == 0)
        def _init():
            acc_ref[...] = jnp.zeros_like(acc_ref)
            if need_wsum:
                wacc_ref[...] = jnp.zeros_like(wacc_ref)

        def _accumulate(valid_rows):
            p = p_ref[...].astype(jnp.float32)
            t = t_ref[...].astype(jnp.float32)
            loss = _elementwise_loss(p, t, task_type, huber_delta, quantile_tau)
            w1 = None
            if has_w1:
                w1 = w1_ref[...].astype(jnp.float32)
                loss = loss * w1
            if has_w2:
                loss = loss * w2_ref[...].astype(jnp.float32)
            if valid_rows is not None and valid_rows < block_rows:
                # Tail / edge block: exclude Pallas edge padding rows.
                row = lax.broadcasted_iota(jnp.int32, (block_rows, _LANE), 0)
                valid = row < valid_rows
                loss = jnp.where(valid, loss, 0.0)
                if need_wsum:
                    w1 = jnp.where(valid, w1, 0.0)
            # Pre-reduce to one vreg: pure VPU adds, accumulator stays (8, 128).
            acc_ref[...] += jnp.sum(loss.reshape(-1, _SUBLANE, _LANE), axis=0)
            if need_wsum:
                wacc_ref[...] += jnp.sum(w1.reshape(-1, _SUBLANE, _LANE), axis=0)

        if not tail_partial and not may_overrun:
            # Common aligned case: no masking, no branching.
            _accumulate(None)
        else:
            last = n_row_blocks - 1
            full_upper = last if tail_partial else n_row_blocks

            @pl.when(logical_blk < full_upper)
            def _full_blocks():
                _accumulate(None)

            if tail_partial:
                @pl.when(logical_blk == last)
                def _tail_block():
                    _accumulate(tail_rows)
            # logical_blk beyond the last real block (clamped duplicates from the
            # parallel core split) contributes nothing.

        @pl.when(i == nsteps - 1)
        def _finalize():
            loss_ref[...] = jnp.broadcast_to(jnp.sum(acc_ref[...]), (1, 1, _LANE))
            if need_wsum:
                wsum_ref[...] = jnp.broadcast_to(jnp.sum(wacc_ref[...]), (1, 1, _LANE))

    return kernel


# ------------------------------ host wrappers -------------------------------- #
@functools.lru_cache(maxsize=None)
def _num_tensorcores() -> int:
    """2 TensorCores/chip on v7x; 1 on v5e/v6e (where the split is pure overhead)."""
    try:
        kind = jax.devices()[0].device_kind.lower()
    except Exception:
        return 1
    return 2 if ("v7" in kind or "7x" in kind) else 1


def _weighted_loss_sums_jax(pred, targ, w1, w2, task_type, huber_delta,
                            quantile_tau, need_wsum):
    loss = _elementwise_loss(pred.astype(jnp.float32), targ.astype(jnp.float32),
                             task_type, huber_delta, quantile_tau)
    if w1 is not None:
        loss = loss * w1.astype(jnp.float32)
    if w2 is not None:
        loss = loss * w2.astype(jnp.float32)
    w_sum = jnp.sum(w1.astype(jnp.float32)) if (need_wsum and w1 is not None) else None
    return jnp.sum(loss), w_sum


def _weighted_loss_sums(pred, targ, w1=None, w2=None, task_type="regression",
                        huber_delta=1.0, quantile_tau=0.5, need_wsum=False,
                        block_rows=None, n_cores=None):
    """Returns (sum(loss(pred,targ) * w1 * w2), sum(w1) or None) as f32 scalars."""
    n = int(pred.size)
    if w1 is not None and w1.dtype == jnp.bool_:
        w1 = w1.astype(jnp.int8)          # keep mask HBM traffic at 1 B/elem
    if w2 is not None and w2.dtype == jnp.bool_:
        w2 = w2.astype(jnp.int8)
    need_wsum = need_wsum and (w1 is not None)

    if n < _FALLBACK_ELEMS:
        # Tiny tensors (small multi-task heads): launch overhead dominates.
        return _weighted_loss_sums_jax(pred, targ, w1, w2, task_type,
                                       huber_delta, quantile_tau, need_wsum)

    has_w1 = w1 is not None
    has_w2 = w2 is not None
    flats = [pred.reshape(-1), targ.reshape(-1)]
    if has_w1:
        flats.append(w1.reshape(-1))
    if has_w2:
        flats.append(w2.reshape(-1))

    # 128-aligned prefix goes through the kernel; the <128-element ragged tail is
    # summed in plain JAX instead of jnp.pad-ing (rewriting) the whole tensor.
    n_main = (n // _LANE) * _LANE
    ragged = n_main != n
    if ragged:
        mains = [f[:n_main].reshape(-1, _LANE) for f in flats]
    else:
        mains = [f.reshape(-1, _LANE) for f in flats]

    rows = n_main // _LANE
    itemsizes = [m.dtype.itemsize for m in mains]
    bytes_per_row = _LANE * sum(itemsizes)

    # Row alignment so packed dtypes (bf16/int8) keep native (16/32, 128) tiling.
    align = max([_SUBLANE] + [32 // sz for sz in itemsizes])
    if block_rows is None:
        block_rows = _VMEM_INFLIGHT_BUDGET // (2 * bytes_per_row)
    block_rows = max(align, (int(block_rows) // align) * align)
    tr = max(align, min(block_rows, (rows // align) * align))
    n_row_blocks = -(-rows // tr)

    if n_cores is None:
        n_cores = _num_tensorcores() if n_row_blocks >= 2 else 1
    n_cores = max(1, min(int(n_cores), n_row_blocks))
    steps = -(-n_row_blocks // n_cores)
    two_axis = n_cores > 1
    may_overrun = two_axis and (n_cores * steps > n_row_blocks)

    if two_axis:
        grid = (n_cores, steps)
        dims = ("parallel", "arbitrary")

        def row_map(c, i):
            # Clamp out-of-range block indices; their contribution is skipped in-kernel.
            return (jnp.minimum(c * steps + i, n_row_blocks - 1), 0)

        out_map = lambda c, i: (c, 0, 0)
    else:
        grid = (steps,)
        dims = ("arbitrary",)
        row_map = lambda i: (i, 0)
        out_map = lambda i: (0, 0, 0)

    in_specs = [pl.BlockSpec((tr, _LANE), row_map) for _ in mains]
    out_shapes = [jax.ShapeDtypeStruct((n_cores, 1, _LANE), jnp.float32)]
    out_specs = [pl.BlockSpec((1, 1, _LANE), out_map)]
    scratch = [pltpu.VMEM((_SUBLANE, _LANE), jnp.float32)]
    if need_wsum:
        out_shapes.append(jax.ShapeDtypeStruct((n_cores, 1, _LANE), jnp.float32))
        out_specs.append(pl.BlockSpec((1, 1, _LANE), out_map))
        scratch.append(pltpu.VMEM((_SUBLANE, _LANE), jnp.float32))

    kernel = _make_loss_kernel(task_type, float(huber_delta), float(quantile_tau),
                               has_w1, has_w2, need_wsum,
                               tr, rows, n_row_blocks, steps, two_axis, may_overrun)

    # double-buffered inputs + a few f32 elementwise temporaries + margin
    in_block_bytes = tr * _LANE * sum(itemsizes)
    tmp_bytes = 4 * tr * _LANE * 4
    vmem_limit = int(min(max(2 * in_block_bytes + tmp_bytes + (2 << 20), 16 << 20),
                         48 << 20))

    outs = pl.pallas_call(
        kernel,
        out_shape=tuple(out_shapes),
        grid=grid,
        in_specs=in_specs,
        out_specs=tuple(out_specs),
        scratch_shapes=scratch,
        compiler_params=pltpu.CompilerParams(
            dimension_semantics=dims, vmem_limit_bytes=vmem_limit),
    )(*mains)

    loss_sum = jnp.sum(outs[0][:, 0, 0])
    w_sum = jnp.sum(outs[1][:, 0, 0]) if need_wsum else None

    if ragged:
        tails = [f[n_main:] for f in flats]
        t_w1 = tails[2] if has_w1 else None
        t_w2 = tails[2 + int(has_w1)] if has_w2 else None
        tail_loss, tail_w = _weighted_loss_sums_jax(
            tails[0], tails[1], t_w1, t_w2, task_type, huber_delta,
            quantile_tau, need_wsum)
        loss_sum = loss_sum + tail_loss
        if w_sum is not None:
            w_sum = w_sum + tail_w

    return loss_sum, w_sum


# ---------------------------- module equivalents ----------------------------- #
class TemporalLossFunctionPallas:
    """Pallas-backed equivalent of TemporalLossFunction (matched-shape path)."""

    def __init__(self, task_type="classification", reduction="mean",
                 pos_weight=None, class_weights=None, focal_gamma=2.0,
                 focal_alpha=None, temporal_discount=1.0,
                 huber_delta=1.0, quantile_tau=0.5):
        if task_type in ("multi_class", "focal"):
            # TODO(synk): multi_class / focal losses (softmax CE, focal weighting) not implemented.
            raise NotImplementedError(f"task_type={task_type!r} not supported in Pallas path")
        if pos_weight is not None or class_weights is not None:
            # TODO(synk): pos_weight / class_weights not implemented in the Pallas path.
            raise NotImplementedError("pos_weight / class_weights not supported in Pallas path")
        self.task_type = task_type
        self.reduction = reduction
        self.huber_delta = float(huber_delta)
        self.quantile_tau = float(quantile_tau)
        # focal_gamma / focal_alpha only matter for 'focal'; temporal_discount is
        # stored but unused in the reference forward as well.

    @staticmethod
    def _dense_time_weights(time_weights, predictions):
        # TODO(synk): this still materializes a dense f32 weight tensor in HBM (one
        # extra read+write pass); a zero-copy path needs an in-kernel row broadcast
        # of SMEM-prefetched time_weights, which requires lane-aligned trailing dims.
        tw = time_weights.astype(jnp.float32)
        while tw.ndim < predictions.ndim:
            tw = tw[..., None]
        return jnp.broadcast_to(tw, predictions.shape)

    def __call__(self, predictions, targets, time_weights=None, mask=None):
        # TODO(synk): the squeeze/expand shape-coercion heuristics of the torch module
        # for 1-D/2-D classification targets are not replicated; shapes must match.
        if predictions.shape != targets.shape:
            raise ValueError(
                f"Predictions shape {predictions.shape} does not match targets shape {targets.shape}")

        w1 = None
        w2 = None
        if mask is not None and time_weights is not None:
            # Stream the raw mask (1 byte when bool) and the time-weight broadcast as
            # separate kernel inputs so the fused sum(w1) is exactly the masked-mean
            # denominator (no extra XLA pass over the mask, no dense mask*tw product).
            w1 = mask
            w2 = self._dense_time_weights(time_weights, predictions)
        elif mask is not None:
            w1 = mask
        elif time_weights is not None:
            w1 = self._dense_time_weights(time_weights, predictions)

        need_wsum = (self.reduction == "mean") and (mask is not None)
        loss_sum, w_sum = _weighted_loss_sums(
            predictions, targets, w1, w2, self.task_type,
            self.huber_delta, self.quantile_tau, need_wsum)

        if self.reduction == "mean":
            if mask is not None:
                return loss_sum / (w_sum + 1e-8)
            return loss_sum / predictions.size
        if self.reduction == "sum":
            return loss_sum
        # TODO(synk): reduction='none' (full per-element loss tensor) not routed
        # through the scalar-sum kernel.
        raise NotImplementedError("reduction='none' not implemented in Pallas path")


class TemporalLossModulePallas:
    """Pallas-backed equivalent of TemporalLossModule.forward."""

    def __init__(self, task_configs, loss_config=None,
                 default_task_type="classification", default_reduction="mean"):
        self.task_configs = task_configs
        self.loss_config = loss_config or {}
        self.default_reduction = self.loss_config.get("reduction", default_reduction)
        self.loss_functions = {}
        self.task_weights = {}
        for name, cfg in task_configs.items():
            self.loss_functions[name] = TemporalLossFunctionPallas(
                task_type=cfg.get("task_type", default_task_type),
                reduction=cfg.get("reduction", self.default_reduction),
                pos_weight=cfg.get("pos_weight", self.loss_config.get("pos_weight")),
                class_weights=cfg.get("class_weights", self.loss_config.get("class_weights")),
                focal_gamma=cfg.get("focal_gamma", self.loss_config.get("focal_gamma", 2.0)),
                focal_alpha=cfg.get("focal_alpha", self.loss_config.get("focal_alpha")),
                temporal_discount=cfg.get("temporal_discount",
                                          self.loss_config.get("temporal_discount", 1.0)),
                huber_delta=cfg.get("huber_delta", self.loss_config.get("huber_delta", 1.0)),
                quantile_tau=cfg.get("quantile_tau", self.loss_config.get("quantile_tau", 0.5)),
            )
            self.task_weights[name] = cfg.get("loss_weight", 1.0)
        self.default_loss_fn = TemporalLossFunctionPallas(
            task_type=default_task_type, reduction=default_reduction)

    def __call__(self, predictions, targets, time_weights=None, masks=None,
                 return_task_losses=False):
        # TODO(synk): heterogeneous per-task pallas_calls are not fused into a single
        # kernel; tiny task heads take the plain-JAX fallback instead.
        if isinstance(predictions, dict) and isinstance(targets, dict):
            task_losses = {}
            for name, pred in predictions.items():
                if name in targets:
                    fn = self.loss_functions.get(name)
                    if fn is not None:
                        tw = time_weights.get(name) if time_weights else None
                        m = masks.get(name) if masks else None
                        loss = fn(pred, targets[name], time_weights=tw, mask=m)
                        task_losses[name] = self.task_weights.get(name, 1.0) * loss
        else:
            task_losses = {"default": self.default_loss_fn(predictions, targets)}
        combined = sum(task_losses.values())
        if return_task_losses:
            return combined, task_losses
        return combined


# -------------------------------- reference ---------------------------------- #
def _ref_loss(task_type, p, t, tw=None, mask=None, reduction="mean",
              huber_delta=1.0, quantile_tau=0.5):
    p = p.astype(jnp.float32)
    t = t.astype(jnp.float32)
    if task_type in ("classification", "multi_label"):
        l = jnp.maximum(p, 0.0) - p * t + jnp.log1p(jnp.exp(-jnp.abs(p)))
    elif task_type == "huber":
        d = jnp.abs(p - t)
        if huber_delta <= 0.0:
            l = d
        else:
            l = jnp.where(d < huber_delta, 0.5 * d * d / huber_delta, d - 0.5 * huber_delta)
    elif task_type == "quantile":
        diff = t - p
        l = jnp.maximum(quantile_tau * diff, (quantile_tau - 1.0) * diff)
    else:
        l = (p - t) ** 2
    if mask is not None:
        l = l * mask.astype(jnp.float32)
    if tw is not None:
        tw = tw.astype(jnp.float32)
        while tw.ndim < l.ndim:
            tw = tw[..., None]
        l = l * tw
    if reduction == "mean":
        if mask is not None:
            return l.sum() / (mask.astype(jnp.float32).sum() + 1e-8)
        return l.mean()
    return l.sum()


if __name__ == "__main__":
    key = jax.random.PRNGKey(0)
    ks = jax.random.split(key, 12)

    # --- small multi-task module demo (tiny heads -> plain-JAX fallback path) --- #
    B, T = 2, 8
    predictions = {
        "event": jax.random.normal(ks[0], (B, T, 1), jnp.float32),
        "value": jax.random.normal(ks[1], (B, T, 4), jnp.float32),
        "trend": jax.random.normal(ks[2], (B, T, 4), jnp.float32),
    }
    targets = {
        "event": (jax.random.uniform(ks[3], (B, T, 1)) > 0.5).astype(jnp.float32),
        "value": jax.random.normal(ks[4], (B, T, 4), jnp.float32),
        "trend": jax.random.normal(ks[5], (B, T, 4), jnp.float32),
    }
    time_weights = {"trend": jnp.tile(
        jnp.linspace(1.0, 0.5, T, dtype=jnp.float32)[None, :], (B, 1))}

    task_configs = {
        "event": {"task_type": "classification", "loss_weight": 1.0},
        "value": {"task_type": "regression", "loss_weight": 0.5},
        "trend": {"task_type": "huber", "loss_weight": 2.0, "huber_delta": 1.0},
    }
    module = TemporalLossModulePallas(task_configs)
    combined, task_losses = module(predictions, targets,
                                   time_weights=time_weights,
                                   return_task_losses=True)
    combined = jax.block_until_ready(combined)
    ref = (1.0 * _ref_loss("classification", predictions["event"], targets["event"])
           + 0.5 * _ref_loss("regression", predictions["value"], targets["value"])
           + 2.0 * _ref_loss("huber", predictions["trend"], targets["trend"],
                             tw=time_weights["trend"]))
    assert abs(float(combined) - float(ref)) < 1e-4, (float(combined), float(ref))

    # --- Pallas kernel paths (sizes above the fallback threshold) --- #
    shape = (16, 300, 7)          # 33600 elements: ragged (not a multiple of 128)
    p_big = jax.random.normal(ks[6], shape, jnp.float32)
    t_big = jax.random.normal(ks[7], shape, jnp.float32)
    m_bool = jax.random.uniform(ks[8], shape) > 0.3
    tw_big = jnp.tile(jnp.linspace(1.0, 0.5, shape[1], dtype=jnp.float32)[None, :],
                      (shape[0], 1))

    # 1) masked mean, bool->int8 mask, forced tiny blocks + forced 2-way core split
    #    (exercises tail masking, clamped duplicate blocks, fused weight sum).
    ls, ws = _weighted_loss_sums(p_big, t_big, w1=m_bool, task_type="regression",
                                 need_wsum=True, block_rows=16, n_cores=2)
    got = jax.block_until_ready(ls / (ws + 1e-8))
    want = _ref_loss("regression", p_big, t_big, mask=m_bool, reduction="mean")
    assert abs(float(got) - float(want)) / (abs(float(want)) + 1e-8) < 1e-4, \
        (float(got), float(want))

    # 2) mask + time_weights through the loss function (two-weight kernel path,
    #    fused mask-sum denominator), default block sizing / core count.
    fn_h = TemporalLossFunctionPallas(task_type="huber", huber_delta=1.0)
    got = jax.block_until_ready(fn_h(p_big, t_big, time_weights=tw_big,
                                     mask=m_bool.astype(jnp.float32)))
    want = _ref_loss("huber", p_big, t_big, tw=tw_big,
                     mask=m_bool.astype(jnp.float32), reduction="mean")
    assert abs(float(got) - float(want)) / (abs(float(want)) + 1e-8) < 1e-4, \
        (float(got), float(want))

    # 3) aligned (no-mask, no-tail) classification path: BCE-with-logits, mean.
    shape2 = (8, 1024, 8)         # 65536 elements, multiple of 128
    p_cls = jax.random.normal(ks[9], shape2, jnp.float32)
    t_cls = (jax.random.uniform(ks[10], shape2) > 0.5).astype(jnp.float32)
    fn_c = TemporalLossFunctionPallas(task_type="classification")
    got = jax.block_until_ready(fn_c(p_cls, t_cls))
    want = _ref_loss("classification", p_cls, t_cls)
    assert abs(float(got) - float(want)) / (abs(float(want)) + 1e-8) < 1e-4, \
        (float(got), float(want))

    # 4) bf16 inputs flow through the kernel in their native dtype.
    p_bf = p_big.astype(jnp.bfloat16)
    t_bf = t_big.astype(jnp.bfloat16)
    ls16, _ = _weighted_loss_sums(p_bf, t_bf, task_type="regression")
    got16 = jax.block_until_ready(ls16 / p_bf.size)
    want16 = _ref_loss("regression", p_bf, t_bf, reduction="mean")
    assert abs(float(got16) - float(want16)) / (abs(float(want16)) + 1e-8) < 2e-3, \
        (float(got16), float(want16))

    print("KERNEL_OK")
</pallas_src>

<mosaic_0001>
module attributes {stable_mosaic.version = 11 : i64} {
  func.func @kernel(%arg0: i32, %arg1: i32, %arg2: memref<32x128xf32, #tpu.memory_space<vmem>>, %arg3: memref<32x128xf32, #tpu.memory_space<vmem>>, %arg4: memref<32x128xi8, #tpu.memory_space<vmem>>, %arg5: memref<1x1x128xf32, #tpu.memory_space<vmem>>, %arg6: memref<1x1x128xf32, #tpu.memory_space<vmem>>, %arg7: memref<8x128xf32, #tpu.memory_space<vmem>>, %arg8: memref<8x128xf32, #tpu.memory_space<vmem>>) attributes {dimension_semantics = [#tpu.dimension_semantics<parallel>, #tpu.dimension_semantics<arbitrary>], iteration_bounds = array<i64: 2, 5>, scalar_prefetch = 0 : i64, scratch_operands = 2 : i64, tpu.core_type = #tpu.core_type<tc>, window_params = [{transform_indices = @transform_0, window_bounds = array<i64: 32, 128>}, {transform_indices = @transform_1, window_bounds = array<i64: 32, 128>}, {transform_indices = @transform_2, window_bounds = array<i64: 32, 128>}, {transform_indices = @transform_3, window_bounds = array<i64: 1, 1, 128>}, {transform_indices = @transform_4, window_bounds = array<i64: 1, 1, 128>}]} {
    %c5_i32 = arith.constant 5 : i32
    %0 = arith.muli %arg0, %c5_i32 : i32
    %1 = arith.addi %0, %arg1 : i32
    %c0_i32 = arith.constant 0 : i32
    %2 = arith.cmpi eq, %arg1, %c0_i32 : i32
    %3 = arith.extui %2 : i1 to i32
    %c0_i32_0 = arith.constant 0 : i32
    %4 = arith.cmpi ne, %3, %c0_i32_0 : i32
    scf.if %4 {
      %cst = arith.constant 0.000000e+00 : f32
      %14 = vector.broadcast %cst : f32 to vector<8x128xf32>
      %c0 = arith.constant 0 : index
      %c0_5 = arith.constant 0 : index
      %15 = vector.load %arg7[%c0, %c0_5] : memref<8x128xf32, #tpu.memory_space<vmem>>, vector<8x128xf32>
      tpu.vector_store %arg7[%c0, %c0_5], %14 {strides = array<i32>} : memref<8x128xf32, #tpu.memory_space<vmem>>, vector<8x128xf32>,
      %cst_6 = arith.constant 0.000000e+00 : f32
      %16 = vector.broadcast %cst_6 : f32 to vector<8x128xf32>
      %c0_7 = arith.constant 0 : index
      %c0_8 = arith.constant 0 : index
      %17 = vector.load %arg8[%c0_7, %c0_8] : memref<8x128xf32, #tpu.memory_space<vmem>>, vector<8x128xf32>
      tpu.vector_store %arg8[%c0_7, %c0_8], %16 {strides = array<i32>} : memref<8x128xf32, #tpu.memory_space<vmem>>, vector<8x128xf32>,
    } else {
    }
    %c8_i32 = arith.constant 8 : i32
    %5 = arith.cmpi slt, %1, %c8_i32 : i32
    %6 = arith.extui %5 : i1 to i32
    %c0_i32_1 = arith.constant 0 : i32
    %7 = arith.cmpi ne, %6, %c0_i32_1 : i32
    scf.if %7 {
      %c0 = arith.constant 0 : index
      %c0_5 = arith.constant 0 : index
      %14 = vector.load %arg2[%c0, %c0_5] : memref<32x128xf32, #tpu.memory_space<vmem>>, vector<32x128xf32>
      %c0_6 = arith.constant 0 : index
      %c0_7 = arith.constant 0 : index
      %15 = vector.load %arg3[%c0_6, %c0_7] : memref<32x128xf32, #tpu.memory_space<vmem>>, vector<32x128xf32>
      %16 = arith.subf %14, %15 : vector<32x128xf32>
      %17 = arith.mulf %16, %16 : vector<32x128xf32>
      %c0_8 = arith.constant 0 : index
      %c0_9 = arith.constant 0 : index
      %18 = vector.load %arg4[%c0_8, %c0_9] : memref<32x128xi8, #tpu.memory_space<vmem>>, vector<32x128xi8>
      %19 = arith.sitofp %18 : vector<32x128xi8> to vector<32x128xf32>
      %20 = arith.mulf %17, %19 : vector<32x128xf32>
      %c0_10 = arith.constant 0 : index
      %c0_11 = arith.constant 0 : index
      %21 = vector.load %arg7[%c0_10, %c0_11] : memref<8x128xf32, #tpu.memory_space<vmem>>, vector<8x128xf32>
      %22 = vector.shape_cast %20 : vector<32x128xf32> to vector<4x8x128xf32>
      %cst = arith.constant dense<0.000000e+00> : vector<8x128xf32>
      %23 = vector.multi_reduction <add>, %22, %cst [0] : vector<4x8x128xf32> to vector<8x128xf32>
      %24 = arith.addf %21, %23 : vector<8x128xf32>
      %c0_12 = arith.constant 0 : index
      %c0_13 = arith.constant 0 : index
      %25 = vector.load %arg7[%c0_12, %c0_13] : memref<8x128xf32, #tpu.memory_space<vmem>>, vector<8x128xf32>
      tpu.vector_store %arg7[%c0_12, %c0_13], %24 {strides = array<i32>} : memref<8x128xf32, #tpu.memory_space<vmem>>, vector<8x128xf32>,
      %c0_14 = arith.constant 0 : index
      %c0_15 = arith.constant 0 : index
      %26 = vector.load %arg8[%c0_14, %c0_15] : memref<8x128xf32, #tpu.memory_space<vmem>>, vector<8x128xf32>
      %27 = vector.shape_cast %19 : vector<32x128xf32> to vector<4x8x128xf32>
      %cst_16 = arith.constant dense<0.000000e+00> : vector<8x128xf32>
      %28 = vector.multi_reduction <add>, %27, %cst_16 [0] : vector<4x8x128xf32> to vector<8x128xf32>
      %29 = arith.addf %26, %28 : vector<8x128xf32>
      %c0_17 = arith.constant 0 : index
      %c0_18 = arith.constant 0 : index
      %30 = vector.load %arg8[%c0_17, %c0_18] : memref<8x128xf32, #tpu.memory_space<vmem>>, vector<8x128xf32>
      tpu.vector_store %arg8[%c0_17, %c0_18], %29 {strides = array<i32>} : memref<8x128xf32, #tpu.memory_space<vmem>>, vector<8x128xf32>,
    } else {
    }
    %c8_i32_2 = arith.constant 8 : i32
    %8 = arith.cmpi eq, %1, %c8_i32_2 : i32
    %9 = arith.extui %8 : i1 to i32
    %c0_i32_3 = arith.constant 0 : i32
    %10 = arith.cmpi ne, %9, %c0_i32_3 : i32
    scf.if %10 {
      %c0 = arith.constant 0 : index
      %c0_5 = arith.constant 0 : index
      %14 = vector.load %arg2[%c0, %c0_5] : memref<32x128xf32, #tpu.memory_space<vmem>>, vector<32x128xf32>
      %c0_6 = arith.constant 0 : index
      %c0_7 = arith.constant 0 : index
      %15 = vector.load %arg3[%c0_6, %c0_7] : memref<32x128xf32, #tpu.memory_space<vmem>>, vector<32x128xf32>
      %16 = arith.subf %14, %15 : vector<32x128xf32>
      %17 = arith.mulf %16, %16 : vector<32x128xf32>
      %c0_8 = arith.constant 0 : index
      %c0_9 = arith.constant 0 : index
      %18 = vector.load %arg4[%c0_8, %c0_9] : memref<32x128xi8, #tpu.memory_space<vmem>>, vector<32x128xi8>
      %19 = arith.sitofp %18 : vector<32x128xi8> to vector<32x128xf32>
      %20 = arith.mulf %17, %19 : vector<32x128xf32>
      %21 = tpu.iota {dimensions = array<i32: 0>} : vector<32x128xi32>
      %c6_i32 = arith.constant 6 : i32
      %22 = vector.broadcast %c6_i32 : i32 to vector<32x128xi32>
      %23 = arith.cmpi slt, %21, %22 : vector<32x128xi32>
      %cst = arith.constant 0.000000e+00 : f32
      %24 = vector.broadcast %cst : f32 to vector<32x128xf32>
      %25 = arith.select %23, %20, %24 : vector<32x128xi1>, vector<32x128xf32>
      %cst_10 = arith.constant 0.000000e+00 : f32
      %26 = vector.broadcast %cst_10 : f32 to vector<32x128xf32>
      %27 = arith.select %23, %19, %26 : vector<32x128xi1>, vector<32x128xf32>
      %c0_11 = arith.constant 0 : index
      %c0_12 = arith.constant 0 : index
      %28 = vector.load %arg7[%c0_11, %c0_12] : memref<8x128xf32, #tpu.memory_space<vmem>>, vector<8x128xf32>
      %29 = vector.shape_cast %25 : vector<32x128xf32> to vector<4x8x128xf32>
      %cst_13 = arith.constant dense<0.000000e+00> : vector<8x128xf32>
      %30 = vector.multi_reduction <add>, %29, %cst_13 [0] : vector<4x8x128xf32> to vector<8x128xf32>
      %31 = arith.addf %28, %30 : vector<8x128xf32>
      %c0_14 = arith.constant 0 : index
      %c0_15 = arith.constant 0 : index
      %32 = vector.load %arg7[%c0_14, %c0_15] : memref<8x128xf32, #tpu.memory_space<vmem>>, vector<8x128xf32>
      tpu.vector_store %arg7[%c0_14, %c0_15], %31 {strides = array<i32>} : memref<8x128xf32, #tpu.memory_space<vmem>>, vector<8x128xf32>,
      %c0_16 = arith.constant 0 : index
      %c0_17 = arith.constant 0 : index
      %33 = vector.load %arg8[%c0_16, %c0_17] : memref<8x128xf32, #tpu.memory_space<vmem>>, vector<8x128xf32>
      %34 = vector.shape_cast %27 : vector<32x128xf32> to vector<4x8x128xf32>
      %cst_18 = arith.constant dense<0.000000e+00> : vector<8x128xf32>
      %35 = vector.multi_reduction <add>, %34, %cst_18 [0] : vector<4x8x128xf32> to vector<8x128xf32>
      %36 = arith.addf %33, %35 : vector<8x128xf32>
      %c0_19 = arith.constant 0 : index
      %c0_20 = arith.constant 0 : index
      %37 = vector.load %arg8[%c0_19, %c0_20] : memref<8x128xf32, #tpu.memory_space<vmem>>, vector<8x128xf32>
      tpu.vector_store %arg8[%c0_19, %c0_20], %36 {strides = array<i32>} : memref<8x128xf32, #tpu.memory_space<vmem>>, vector<8x128xf32>,
    } else {
    }
    %c4_i32 = arith.constant 4 : i32
    %11 = arith.cmpi eq, %arg1, %c4_i32 : i32
    %12 = arith.extui %11 : i1 to i32
    %c0_i32_4 = arith.constant 0 : i32
    %13 = arith.cmpi ne, %12, %c0_i32_4 : i32
    scf.if %13 {
      %c0 = arith.constant 0 : index
      %c0_5 = arith.constant 0 : index
      %14 = vector.load %arg7[%c0, %c0_5] : memref<8x128xf32, #tpu.memory_space<vmem>>, vector<8x128xf32>
      %15 = vector.shape_cast %14 : vector<8x128xf32> to vector<1x8x128xf32>
      %cst = arith.constant dense<0.000000e+00> : vector<1xf32>
      %16 = vector.multi_reduction <add>, %15, %cst [1, 2] : vector<1x8x128xf32> to vector<1xf32>
      %17 = vector.shape_cast %16 : vector<1xf32> to vector<1x1x1xf32>
      %18 = vector.extract %17[0, 0, 0] : f32 from vector<1x1x1xf32>
      %19 = vector.broadcast %18 : f32 to vector<1x1x128xf32>
      %c0_6 = arith.constant 0 : index
      %c0_7 = arith.constant 0 : index
      %c0_8 = arith.constant 0 : index
      %20 = vector.load %arg5[%c0_6, %c0_7, %c0_8] : memref<1x1x128xf32, #tpu.memory_space<vmem>>, vector<1x1x128xf32>
      tpu.vector_store %arg5[%c0_6, %c0_7, %c0_8], %19 {strides = array<i32>} : memref<1x1x128xf32, #tpu.memory_space<vmem>>, vector<1x1x128xf32>,
      %c0_9 = arith.constant 0 : index
      %c0_10 = arith.constant 0 : index
      %21 = vector.load %arg8[%c0_9, %c0_10] : memref<8x128xf32, #tpu.memory_space<vmem>>, vector<8x128xf32>
      %22 = vector.shape_cast %21 : vector<8x128xf32> to vector<1x8x128xf32>
      %cst_11 = arith.constant dense<0.000000e+00> : vector<1xf32>
      %23 = vector.multi_reduction <add>, %22, %cst_11 [1, 2] : vector<1x8x128xf32> to vector<1xf32>
      %24 = vector.shape_cast %23 : vector<1xf32> to vector<1x1x1xf32>
      %25 = vector.extract %24[0, 0, 0] : f32 from vector<1x1x1xf32>
      %26 = vector.broadcast %25 : f32 to vector<1x1x128xf32>
      %c0_12 = arith.constant 0 : index
      %c0_13 = arith.constant 0 : index
      %c0_14 = arith.constant 0 : index
      %27 = vector.load %arg6[%c0_12, %c0_13, %c0_14] : memref<1x1x128xf32, #tpu.memory_space<vmem>>, vector<1x1x128xf32>
      tpu.vector_store %arg6[%c0_12, %c0_13, %c0_14], %26 {strides = array<i32>} : memref<1x1x128xf32, #tpu.memory_space<vmem>>, vector<1x1x128xf32>,
    } else {
    }
    return
  }
  func.func @transform_0(%arg0: i32, %arg1: i32) -> (i32, i32) {
    %c5_i32 = arith.constant 5 : i32
    %0 = arith.muli %arg0, %c5_i32 : i32
    %1 = arith.addi %0, %arg1 : i32
    %c8_i32 = arith.constant 8 : i32
    %2 = arith.minsi %1, %c8_i32 : i32
    %c0_i32 = arith.constant 0 : i32
    %c0_i32_0 = arith.constant 0 : i32
    return %2, %c0_i32 : i32, i32
  }
  func.func @transform_1(%arg0: i32, %arg1: i32) -> (i32, i32) {
    %c5_i32 = arith.constant 5 : i32
    %0 = arith.muli %arg0, %c5_i32 : i32
    %1 = arith.addi %0, %arg1 : i32
    %c8_i32 = arith.constant 8 : i32
    %2 = arith.minsi %1, %c8_i32 : i32
    %c0_i32 = arith.constant 0 : i32
    %c0_i32_0 = arith.constant 0 : i32
    return %2, %c0_i32 : i32, i32
  }
  func.func @transform_2(%arg0: i32, %arg1: i32) -> (i32, i32) {
    %c5_i32 = arith.constant 5 : i32
    %0 = arith.muli %arg0, %c5_i32 : i32
    %1 = arith.addi %0, %arg1 : i32
    %c8_i32 = arith.constant 8 : i32
    %2 = arith.minsi %1, %c8_i32 : i32
    %c0_i32 = arith.constant 0 : i32
    %c0_i32_0 = arith.constant 0 : i32
    return %2, %c0_i32 : i32, i32
  }
  func.func @transform_3(%arg0: i32, %arg1: i32) -> (i32, i32, i32) {
    %c0_i32 = arith.constant 0 : i32
    %c0_i32_0 = arith.constant 0 : i32
    %c0_i32_1 = arith.constant 0 : i32
    return %arg0, %c0_i32, %c0_i32_0 : i32, i32, i32
  }
  func.func @transform_4(%arg0: i32, %arg1: i32) -> (i32, i32, i32) {
    %c0_i32 = arith.constant 0 : i32
    %c0_i32_0 = arith.constant 0 : i32
    %c0_i32_1 = arith.constant 0 : i32
    return %arg0, %c0_i32, %c0_i32_0 : i32, i32, i32
  }
}

</mosaic_0001>

<bundles_post_ra>
// kernel: tpu_custom_call.1
= control target key start
LH: loop header
LB: loop body
LE: loop exit
PB: predicated region body
PF: predicated region fallthrough
CT: control target
= control target key end

     0   :  { %s1515_s0 = inlined_call_operand.hbm [shape: f32[262,128], index: 0, kind: input, shape index: {}]   ;;  %s1516_s1 = inlined_call_operand.hbm [shape: f32[262,128], index: 1, kind: input, shape index: {}]   ;;  %s1517_s2 = inlined_call_operand.hbm [shape: s8[262,128], index: 2, kind: input, shape index: {}]   ;;  %s1518_s3 = inlined_call_operand.hbm [shape: f32[2,1,128], index: 3, kind: output, shape index: {0}]   ;;  %s1519_s4 = inlined_call_operand.hbm [shape: f32[2,1,128], index: 4, kind: output, shape index: {1}]  }
   0x1   :  { %1525 = sst [smem:[#allocation24_spill]] %s1515_s0 }
   0x2   :  { %10 = vsyncpa [#allocation5], 0 }
   0x3   :  { %12 = vsyncpa [#allocation5 + $0x1], 0 }
   0x4   :  { %13 = vsyncpa [#allocation8], 0 }
   0x5   :  { %15 = vsyncpa [#allocation8 + $0x1], 0 }
   0x6   :  { %16 = vsyncpa [#allocation6], 0 }
   0x7   :  { %18 = vsyncpa [#allocation6 + $0x1], 0 }
   0x8   :  { %19 = vsyncpa [#allocation12], 0 }
   0x9   :  { %21 = vsyncpa [#allocation12 + $0x1], 0  ;;  %s1156_s15 = smov 0   ;;  %s1158_s16 = smov 0  }
   0xa   :  { %s1160_s17 = smov 0   ;;  %s1162_s18 = smov 0  }
   0xb   :  { %s1164_s19 = smov 0   ;;  %s1166_s20 = smov 0  }
   0xc   :  { %s1168_s21 = smov 0   ;;  %s1170_s22 = smov 0  }
   0xd   :  { %s1172_s23 = smov 0   ;;  %s1174_s24 = smov 0  }
   0xe   :  { %s1176_s25 = smov 0  }
   0xf LB: > { %1526 = sst [smem:[#allocation17_spill]] %s1085_s17  ;;  %s1212_s26 = sadd.s32 4294967295, %s1117_s25   ;;  %s1117_s25 = sphi %s1176_s25, %s27_s25   ;;  %s1113_s24 = sphi %s1174_s24, %s1545_s24   ;;  %s1109_s23 = sphi %s1172_s23, %s1551_s23   ;;  %s1105_s22 = sphi %s1170_s22, %s1543_s22   ;;  %s1101_s21 = sphi %s1168_s21, %s1542_s21   ;;  %s1097_s20 = sphi %s1166_s20, %s1550_s20   ;;  %s1093_s19 = sphi %s1164_s19, %s1549_s19   ;;  %s1089_s18 = sphi %s1162_s18, %s1548_s18   ;;  %s1085_s17 = sphi %s1160_s17, %s1540_s17   ;;  %s1081_s16 = sphi %s1158_s16, %s1547_s16   ;;  %s1077_s15 = sphi %s1156_s15, %s1546_s15  }
  0x10   : > { %1527 = sst [smem:[#allocation18_spill]] %s1109_s23  ;;  %s723_s27 = sadd.s32 4294967294, %s1117_s25  }
  0x11   : > { %1528 = sst [smem:[#allocation19_spill]] %s1113_s24  ;;  %s36_s28 = sadd.s32 1, %s1109_s23 }
  0x12   : > { %s39_s29 = sadd.s32 1, %s1113_s24  ;;  %p37_p0 = scmp.ge.s32.totalorder %s36_s28, 5 }
  0x13   : > { %s43_s30 = smul.u32 5, %s1113_s24  ;;  %s54_s5 = sadd.s32 1, %s1097_s20 }
  0x14   : > { %p61_p1 = scmp.ne.s32.totalorder %s1097_s20, %s1093_s19  ;;  %s1553_s28 = smov (%p37_p0, %s36_s28), 0 }
  0x15   : > { %1529 = sst [smem:[#allocation20_spill]] %s1553_s28  ;;  %s1555_s29 = smov (!%p37_p0, %s39_s29), %s1113_s24 }
  0x16   : > { %s44_s6 = sadd.s32 %s1109_s23, %s43_s30  ;;  %p62_p2 = scmp.eq.s32.totalorder %s1117_s25, 0 }
  0x17   : > { %p41_p3 = scmp.ge.s32.totalorder %s1555_s29, 2  ;;  %p45_p4 = scmp.lt.s32.totalorder %s44_s6, 8 }
  0x18   : > { %p1226_p5 = por %p62_p2, %p61_p1  ;;  %p67_p6 = scmp.ne.s32.totalorder %s1093_s19, %s1089_s18 }
  0x19   : > { %s1557_s29 = smov (%p41_p3, %s1555_s29), 0  ;;  %s1559_s6 = smov (!%p45_p4, %s44_s6), 8 }
  0x1a   : > { %1531 = sst [smem:[#allocation21_spill]] %s1557_s29  ;;  %s47_s8 = smul.u32 5, %s1557_s29 }
  0x1b   : > { %p68_p7 = scmp.eq.s32.totalorder %s1212_s26, 0  ;;  %s145_s9 = ssub.s32 %s1113_s24, %s1557_s29 }
  0x1c   : > { %s148_s10 = sadd.s32 1, %s1085_s17  ;;  %s48_s11 = sadd.s32 %s47_s8, %s1553_s28 }
  0x1d   : > { %p1242_p8 = por %p68_p7, %p67_p6  ;;  %p49_p9 = scmp.lt.s32.totalorder %s48_s11, 8 }
  0x1e   : > { %p146_p10 = scmp.eq.s32.totalorder %s145_s9, 0  ;;  %p158_p11 = scmp.ne.s32.totalorder %s1085_s17, %s1081_s16 }
  0x1f   : > { %p159_p12 = scmp.eq.s32.totalorder %s1212_s26, 9  ;;  %s1561_s11 = smov (!%p49_p9, %s48_s11), 8 }
  0x20   : > { %s1250_s13 = scalar_select %p146_p10, %s1085_s17, %s148_s10  }
  0x21   : > { %s51_s14 = ssub.s32 %s1559_s6, %s1561_s11  ;;  %p1253_p13 = por %p159_p12, %p158_p11 }
  0x22   : > { %1533 = sst [smem:[#allocation22_spill]] %s1250_s13  ;;  %p52_p0 = scmp.eq.s32.totalorder %s51_s14, 0 }
  0x23   : > { %p164_p1 = scmp.ne.s32.totalorder %s1081_s16, %s1077_s15  ;;  %p165_p2 = scmp.eq.s32.totalorder %s723_s27, 9 }
  0x24   : > { %s1264_s30 = scalar_select %p52_p0, %s1097_s20, %s54_s5  }
  0x25   : > { %p1266_p3 = por %p165_p2, %p164_p1  ;;  %p725_p4 = scmp.ge.s32.totalorder %s1117_s25, 10 }
  0x26   : > { %1535 = sst [smem:[#allocation23_spill]] %s1264_s30 }
  0x27   : > { %s1536_s8 = scalar_select %p1266_p3, 1, 0 }
  0x28   : > { %207 = sbr.rel (%p725_p4) target bundleno = 147 (0x93), region = 16 }
  0x2d   : > { %210 = sbr.rel (!%p1226_p5) target bundleno = 83 (0x53), region = 20  ;;  %s211_s9 = sand.u32 (%p1226_p5), 1, %s1097_s20  }
  0x2e   : > { %s727_s10 = sshll.u32 (%p1226_p5), %s1559_s6, 2  ;;  %s726_s11 = sshll.u32 (%p1226_p5), %s211_s9, 5 }
  0x2f   : > { %s221_s14 = ssub.s32 (%p1226_p5), 33, %s727_s10  ;;  %s1278_s29 = scalar_lea.sflag (%p1226_p5), [#allocation5], %s211_s9 }
  0x30   : > { %p222_p6 = scmp.lt.s32.totalorder (%p1226_p5), %s221_s14, 4  ;;  %s215_s28 = scalar_lea.vmem (%p1226_p5), [#allocation4], %s726_s11 }
  0x32   : > { %s1563_s14 = smov (!%p222_p6, %s221_s14), 4 }
  0x33   : > { %s1275_s27 = sshll.u32 %s1563_s14, 7 }
  0x34   : > { %s226_s5 = ssub.s32 512, %s1275_s27 }
  0x35   : > { %227 = vsyncadd %s1278_s29, %s226_s5  ;;  %p729_p7 = scmp.ne.s32.totalorder %s1275_s27, 0  ;;  %s759_s24 = sshll.u32 %s1559_s6, 9 }
  0x36   : > { %s1537_s0 = sld [smem:[#allocation24_spill]]  ;;  %s232_s14 = sshll.u32 %s215_s28, 4  ;;  %s1288_s14 = int_to_ptr.vmem [resolvable:$true] %s232_s14 }
  0x3c   : > { %s1286_s10 = scalar_lea.hbm %s1537_s0, %s759_s24  ;;  %s889_s13 = scalar_lea.hbm %s1537_s0, 4224 }
  0x3d   : > { %s885_s9 = scalar_lea.hbm %s1286_s10, %s1275_s27 }
  0x3e   : > { %p886_p9 = scmp.ne.s32.totalorder %s1286_s10, %s885_s9  ;;  %p891_p12 = scmp.lt.s32.totalorder %s889_s13, %s885_s9 }
  0x40   : > { %p887_p10 = pnand %p886_p9, %p729_p7 }
  0x42   : > { %p888_p11 = pneg %p887_p10 }
  0x44   : > { %p893_p0 = pnand %p891_p12, %p888_p11 }
  0x46   : > { %896 = shalt.err (!%p893_p0)
}
  0x47   : > { %s897_s23 = scalar_lea.vmem %s1288_s14, %s1275_s27  ;;  %s1119_s24 = smov [#allocation4]  }
  0x48   : > { %p898_p1 = scmp.ne.s32.totalorder %s1288_s14, %s897_s23  ;;  %s901_s28 = sshll.u32 %s1119_s24, 4  ;;  %s902_s28 = int_to_ptr.vmem [resolvable:$false] %s901_s28 }
  0x49   : > { %s903_s30 = scalar_lea.vmem %s902_s28, 1024  ;;  %p904_p6 = scmp.lt.s32.totalorder %s1288_s14, %s902_s28 }
  0x4a   : > { %p899_p2 = pnand %p898_p1, %p729_p7  ;;  %p905_p9 = scmp.lt.s32.totalorder %s903_s30, %s897_s23 }
  0x4c   : > { %p900_p4 = pneg %p899_p2  ;;  %p906_p10 = por %p905_p9, %p904_p6 }
  0x4e   : > { %p907_p3 = pnand %p906_p10, %p900_p4 }
  0x50   : > { %910 = shalt.err (!%p907_p3)
}
  0x51   : > { %s1120_s13 = smov 128   ;;  %s1121_s9 = smov 8  }
  0x52   : > { %238 = dma.hbm_to_vmem [thread:$0]  (%p729_p7), %s1286_s10, %s1275_s27, %s1288_s14, %s1278_s29, %s1120_s13, %s1120_s13, %s1121_s9  }
  0x53 PF: > { %241 = sbr.rel (!%p1226_p5) target bundleno = 115 (0x73), region = 24  ;;  %s242_s11 = sand.u32 (%p1226_p5), 1, %s1117_s25  }
  0x54   : > { %s244_s5 = sand.u32 (%p1226_p5), 1, %s1097_s20   ;;  %s734_s24 = sshll.u32 (%p1226_p5), %s1559_s6, 2 }
  0x55   : > { %s733_s23 = sshll.u32 (%p1226_p5), %s244_s5, 5  ;;  %s252_s28 = ssub.s32 (%p1226_p5), 33, %s734_s24 }
  0x56   : > { %p253_p3 = scmp.lt.s32.totalorder (%p1226_p5), %s252_s28, 4  ;;  %s1318_s17 = scalar_lea.sflag (%p1226_p5), [#allocation8], %s242_s11 }
  0x57   : > { %s246_s29 = scalar_lea.vmem (%p1226_p5), [#allocation7], %s733_s23 }
  0x58   : > { %s1565_s28 = smov (!%p253_p3, %s252_s28), 4 }
  0x59   : > { %s1315_s30 = sshll.u32 %s1565_s28, 7 }
  0x5a   : > { %s257_s0 = ssub.s32 512, %s1315_s30 }
  0x5b   : > { %258 = vsyncadd %s1318_s17, %s257_s0  ;;  %p736_p7 = scmp.ne.s32.totalorder %s1315_s30, 0  ;;  %s760_s27 = sshll.u32 %s1559_s6, 9 }
  0x5c   : > { %s1326_s13 = scalar_lea.hbm %s1516_s1, %s760_s27  ;;  %s263_s9 = sshll.u32 %s246_s29, 4  ;;  %s1328_s9 = int_to_ptr.vmem [resolvable:$true] %s263_s9 }
  0x5d   : > { %s911_s11 = scalar_lea.hbm %s1326_s13, %s1315_s30  ;;  %s915_s23 = scalar_lea.hbm %s1516_s1, 4224 }
  0x5e   : > { %p912_p11 = scmp.ne.s32.totalorder %s1326_s13, %s911_s11  ;;  %p917_p1 = scmp.lt.s32.totalorder %s915_s23, %s911_s11 }
  0x60   : > { %p913_p12 = pnand %p912_p11, %p736_p7 }
  0x62   : > { %p914_p0 = pneg %p913_p12 }
  0x64   : > { %p919_p2 = pnand %p917_p1, %p914_p0 }
  0x66   : > { %922 = shalt.err (!%p919_p2)
}
  0x67   : > { %s923_s24 = scalar_lea.vmem %s1328_s9, %s1315_s30  ;;  %s1122_s28 = smov [#allocation7]  }
  0x68   : > { %p924_p4 = scmp.ne.s32.totalorder %s1328_s9, %s923_s24  ;;  %s927_s29 = sshll.u32 %s1122_s28, 4  ;;  %s928_s29 = int_to_ptr.vmem [resolvable:$false] %s927_s29 }
  0x69   : > { %s929_s27 = scalar_lea.vmem %s928_s29, 1024  ;;  %p930_p10 = scmp.lt.s32.totalorder %s1328_s9, %s928_s29 }
  0x6a   : > { %p925_p6 = pnand %p924_p4, %p736_p7  ;;  %p931_p3 = scmp.lt.s32.totalorder %s929_s27, %s923_s24 }
  0x6c   : > { %p926_p9 = pneg %p925_p6  ;;  %p932_p11 = por %p931_p3, %p930_p10 }
  0x6e   : > { %p933_p12 = pnand %p932_p11, %p926_p9 }
  0x70   : > { %936 = shalt.err (!%p933_p12)
}
  0x71   : > { %s1123_s10 = smov 128   ;;  %s1124_s14 = smov 8  }
  0x72   : > { %269 = dma.hbm_to_vmem [thread:$0]  (%p736_p7), %s1326_s13, %s1315_s30, %s1328_s9, %s1318_s17, %s1123_s10, %s1123_s10, %s1124_s14  }
  0x73 PF: > { %272 = sbr.rel (!%p1226_p5) target bundleno = 147 (0x93), region = 28  ;;  %s273_s11 = sand.u32 (%p1226_p5), 1, %s1117_s25  }
  0x74   : > { %s275_s0 = sand.u32 (%p1226_p5), 1, %s1097_s20   ;;  %s741_s23 = sshll.u32 (%p1226_p5), %s1559_s6, 2 }
  0x75   : > { %s740_s5 = sshll.u32 (%p1226_p5), %s275_s0, 3  ;;  %s283_s24 = ssub.s32 (%p1226_p5), 33, %s741_s23 }
  0x76   : > { %p284_p0 = scmp.lt.s32.totalorder (%p1226_p5), %s283_s24, 4  ;;  %s1358_s27 = scalar_lea.sflag (%p1226_p5), [#allocation8], %s273_s11 }
  0x77   : > { %s277_s17 = scalar_lea.vmem (%p1226_p5), [#allocation9], %s740_s5 }
  0x78   : > { %s1567_s24 = smov (!%p284_p0, %s283_s24), 4 }
  0x79   : > { %s1355_s28 = sshll.u32 %s1567_s24, 5 }
  0x7a   : > { %s288_s29 = ssub.s32 128, %s1355_s28 }
  0x7b   : > { %289 = vsyncadd %s1358_s27, %s288_s29  ;;  %p743_p5 = scmp.ne.s32.totalorder %s1355_s28, 0  ;;  %s761_s7 = sshll.u32 %s1559_s6, 7 }
  0x7c   : > { %s1366_s9 = scalar_lea.hbm %s1517_s2, %s761_s7  ;;  %s294_s10 = sshll.u32 %s277_s17, 4  ;;  %s1368_s10 = int_to_ptr.vmem [resolvable:$true] %s294_s10 }
  0x7d   : > { %s937_s14 = scalar_lea.hbm %s1366_s9, %s1355_s28  ;;  %s941_s5 = scalar_lea.hbm %s1517_s2, 1056 }
  0x7e   : > { %p938_p7 = scmp.ne.s32.totalorder %s1366_s9, %s937_s14  ;;  %p943_p4 = scmp.lt.s32.totalorder %s941_s5, %s937_s14 }
  0x80   : > { %p939_p1 = pnand %p938_p7, %p743_p5 }
  0x82   : > { %p940_p2 = pneg %p939_p1 }
  0x84   : > { %p945_p6 = pnand %p943_p4, %p940_p2 }
  0x86   : > { %948 = shalt.err (!%p945_p6)
}
  0x87   : > { %s949_s6 = scalar_lea.vmem %s1368_s10, %s1355_s28  ;;  %s1125_s23 = smov [#allocation9]  }
  0x88   : > { %p950_p9 = scmp.ne.s32.totalorder %s1368_s10, %s949_s6  ;;  %s953_s24 = sshll.u32 %s1125_s23, 4  ;;  %s954_s24 = int_to_ptr.vmem [resolvable:$false] %s953_s24 }
  0x89   : > { %s955_s29 = scalar_lea.vmem %s954_s24, 256  ;;  %p956_p11 = scmp.lt.s32.totalorder %s1368_s10, %s954_s24 }
  0x8a   : > { %p951_p10 = pnand %p950_p9, %p743_p5  ;;  %p957_p12 = scmp.lt.s32.totalorder %s955_s29, %s949_s6 }
  0x8c   : > { %p952_p3 = pneg %p951_p10  ;;  %p958_p0 = por %p957_p12, %p956_p11 }
  0x8e   : > { %p959_p7 = pnand %p958_p0, %p952_p3 }
  0x90   : > { %962 = shalt.err (!%p959_p7)
}
  0x91   : > { %s1126_s17 = smov 32   ;;  %s1127_s7 = smov 2  }
  0x92   : > { %300 = dma.hbm_to_vmem [thread:$0]  (%p743_p5), %s1366_s9, %s1355_s28, %s1368_s10, %s1358_s27, %s1126_s17, %s1126_s17, %s1127_s7  }
  0x93 PF: > { %p747_p1 = scmp.ge.s32.totalorder %s1117_s25, 1  ;;  %p302_p2 = scmp.lt.s32.totalorder %s1117_s25, 11 }
  0x95   : > { %p303_p4 = pnand %p747_p1, %p302_p2 }
  0x96   : > { %s308_s30 = sand.u32 (!%p303_p4), 1, %s1093_s19  }
  0x97   : > { %306 = sbr.rel (%p303_p4) target bundleno = 477 (0x1dd), region = 32  ;;  %s748_s13 = sshll.u32 (!%p303_p4), %s308_s30, 5 }
  0x98   : > { %s309_s14 = scalar_lea.sflag (!%p303_p4), [#allocation5], %s308_s30  ;;  %s1393_s11 = scalar_lea.vmem (!%p303_p4), [#allocation4], %s748_s13 }
  0x9c   : > { %1060 = dma.done.wait (%p1242_p8), %s309_s14, 512  }
  0x9d   : > { %1062 = vsyncadd (%p1242_p8), %s309_s14, 4294966784  ;;  %s317_s28 = sand.u32 1, %s1212_s26   ;;  %s1400_s9 = scalar_lea.vmem [#allocation7], %s748_s13 }
  0x9e   : > { %s318_s27 = scalar_lea.sflag [#allocation8], %s317_s28 }
  0x9f   : > { %1064 = dma.done.wait (%p1242_p8), %s318_s27, 640  }
  0xa0   : > { %1066 = vsyncadd (%p1242_p8), %s318_s27, 4294966656  ;;  %s750_s10 = sshll.u32 %s308_s30, 3  ;;  %s1407_s0 = sand.u32 1, %s1081_s16  }
  0xa1   : > { %s395_s5 = smul.u32 5, %s1105_s22  ;;  %s1413_s26 = scalar_lea.vmem [#allocation9], %s750_s10 }
  0xa2   : > { %s361_s23 = scalar_lea.vmem [#allocation10], %s1407_s0  ;;  %s367_s24 = scalar_lea.vmem [#allocation11], %s1407_s0 }
  0xa3   : > { %s1411_s6 = sadd.s32 %s1101_s21, %s395_s5  ;;  %p751_p5 = scmp.ne.s32.totalorder %s1101_s21, 0 }
  0xa5   : > { %400 = sbr.rel (%p751_p5) target bundleno = 172 (0xac), region = 48 }
  0xaa   : > { %v1128_v0 = vmov 0.0  }
  0xab   : > { %401 = vst [vmem:[#allocation2] sm:$0xff] %v1128_v0  ;;  %402 = vst [vmem:[#allocation3] sm:$0xff] %v1128_v0 }
  0xac PF: > { %p752_p8 = scmp.ge.s32.totalorder %s1411_s6, 8 }
  0xae   : > { %406 = sbr.rel (%p752_p8) target bundleno = 197 (0xc5), region = 52 }
  0xb3   : > { %v407_v1 = vld [vmem:[%s1393_s11] sm:$0xff]  ;;  %v408_v2 = vld [vmem:[%s1393_s11 + $0x8] sm:$0xff]  ;;  %v409_v3 = vld [vmem:[%s1393_s11 + $0x10] sm:$0xff] }
  0xb4   : > { %v410_v4 = vld [vmem:[%s1393_s11 + $0x18] sm:$0xff]  ;;  %v411_v5 = vld [vmem:[%s1400_s9] sm:$0xff]  ;;  %v412_v6 = vld [vmem:[%s1400_s9 + $0x8] sm:$0xff] }
  0xb5   : > { %v413_v7 = vld [vmem:[%s1400_s9 + $0x10] sm:$0xff]  ;;  %v414_v8 = vld [vmem:[%s1400_s9 + $0x18] sm:$0xff]  ;;  %v415_v9 = vsub.f32 %v407_v1, %v411_v5  ;;  %v416_v10 = vsub.f32 %v408_v2, %v412_v6  ;;  %v763_v11 = vld [vmem:[%s1413_s26] sm:$0xff]  }
  0xb6   : > { %v417_v12 = vsub.f32 %v409_v3, %v413_v7  ;;  %v418_v13 = vsub.f32 %v410_v4, %v414_v8  ;;  %v764_v14 = vunpack.c.0.s8 %v763_v11  ;;  %v765_v15 = vunpack.c.1.s8 %v763_v11  ;;  %v445_v33 = vld [vmem:[#allocation3] sm:$0xff]  ;;  %v439_v36 = vld [vmem:[#allocation2] sm:$0xff] }
  0xb7   : > { %v419_v16 = vmul.f32 %v415_v9, %v415_v9  ;;  %v420_v17 = vmul.f32 %v416_v10, %v416_v10  ;;  %v768_v18 = vunpack.c.2.s8 %v763_v11  ;;  %v769_v19 = vunpack.c.3.s8 %v763_v11 }
  0xb8   : > { %v421_v20 = vmul.f32 %v417_v12, %v417_v12  ;;  %v422_v21 = vmul.f32 %v418_v13, %v418_v13  ;;  %v431_v22 = vcvt.s32.f32 %v764_v14  ;;  %v432_v23 = vcvt.s32.f32 %v765_v15 }
  0xb9   : > { %v433_v24 = vcvt.s32.f32 %v768_v18  ;;  %v434_v25 = vcvt.s32.f32 %v769_v19 }
  0xba   : > { %v435_v26 = vmul.f32 %v431_v22, %v419_v16  ;;  %v436_v27 = vmul.f32 %v432_v23, %v420_v17  ;;  %v446_v28 = vadd.f32 %v432_v23, %v431_v22 }
  0xbb   : > { %v437_v29 = vmul.f32 %v433_v24, %v421_v20  ;;  %v438_v30 = vmul.f32 %v434_v25, %v422_v21 }
  0xbc   : > { %v440_v31 = vadd.f32 %v436_v27, %v435_v26  ;;  %v447_v32 = vadd.f32 %v446_v28, %v433_v24 }
  0xbe   : > { %v441_v34 = vadd.f32 %v440_v31, %v437_v29  ;;  %v448_v35 = vadd.f32 %v447_v32, %v434_v25 }
  0xc0   : > { %v442_v37 = vadd.f32 %v441_v34, %v438_v30  ;;  %v449_v38 = vadd.f32 %v448_v35, %v445_v33 }
  0xc2   : > { %v443_v39 = vadd.f32 %v442_v37, %v439_v36  ;;  %450 = vst [vmem:[#allocation3] sm:$0xff] %v449_v38 }
  0xc4   : > { %444 = vst [vmem:[#allocation2] sm:$0xff] %v443_v39 }
  0xc5 PF: > { %p753_p6 = scmp.ne.s32.totalorder %s1411_s6, 8 }
  0xc7   : > { %454 = sbr.rel (%p753_p6) target bundleno = 217 (0xd9), region = 56 }
  0xcc   : > { %v455_v40 = vld [vmem:[%s1393_s11] sm:$0xff]  ;;  %v487_v43 = vlaneseq  ;;  %v510_v49 = vld [vmem:[#allocation3] sm:$0xff]  ;;  %v504_v51 = vld [vmem:[#allocation2] sm:$0xff] }
  0xcd   : > { %v459_v41 = vld [vmem:[%s1400_s9] sm:$0xff] }
  0xce   : > { %v471_v42 = vld [vmem:[%s1413_s26] sm:$0x3]  ;;  %v463_v44 = vsub.f32 %v455_v40, %v459_v41  ;;  %v488_v46 = vshrl.u32 %v487_v43, 7 }
  0xcf   : > { %v475_v45 = vunpack.c.0.s8 %v471_v42 }
  0xd0   : > { %v467_v47 = vmul.f32 %v463_v44, %v463_v44  ;;  %vm492_vm0 = vcmp.lt.s32.totalorder %v488_v46, 6 }
  0xd1   : > { %v479_v48 = vcvt.s32.f32 %v475_v45 }
  0xd3   : > { %v483_v50 = vmul.f32 %v479_v48, %v467_v47  ;;  %v500_v52 = vsel %vm492_vm0, %v479_v48, 0.0 }
  0xd4   : > { %v514_v53 = vadd.f32 %v510_v49, %v500_v52 }
  0xd5   : > { %v496_v54 = vsel %vm492_vm0, %v483_v50, 0.0 }
  0xd6   : > { %v508_v55 = vadd.f32 %v504_v51, %v496_v54  ;;  %515 = vst [vmem:[#allocation3] sm:$0xff] %v514_v53 }
  0xd8   : > { %509 = vst [vmem:[#allocation2] sm:$0xff] %v508_v55 }
  0xd9 PF: > { %p754_p9 = scmp.ne.s32.totalorder %s1101_s21, 4 }
  0xdb   : > { %519 = sbr.rel (%p754_p9) target bundleno = 431 (0x1af), region = 60 }
  0xe0   : > { %v520_v56 = vld [vmem:[#allocation2] sm:$0xff]  ;;  %v532_v57 = vld [vmem:[#allocation3] sm:$0xff] }
  0xe1   : > { %521 = vadd.xlane.f32.xlu0 %v520_v56 }
  0xe5   : > { %533 = vadd.xlane.f32.xlu0 %v532_v57 }
 0x16a   : > { %v522_v58 = vpop.xlane.xlu0 %521 }
 0x16b   : > { %v523_v59 = vrot.slane %v522_v58, 4 }
 0x16d   : > { %v524_v60 = vadd.f32 %v523_v59, %v522_v58 }
 0x16e   : > { %v534_v61 = vpop.xlane.xlu0 %533 }
 0x16f   : > { %v525_v62 = vrot.slane %v524_v60, 2  ;;  %v535_v63 = vrot.slane %v534_v61, 4 }
 0x171   : > { %v536_v0 = vadd.f32 %v535_v63, %v534_v61  ;;  %v526_v1 = vadd.f32 %v525_v62, %v524_v60 }
 0x173   : > { %v537_v2 = vrot.slane %v536_v0, 2  ;;  %v527_v3 = vrot.slane %v526_v1, 1 }
 0x175   : > { %v538_v4 = vadd.f32 %v537_v2, %v536_v0  ;;  %v528_v5 = vadd.f32 %v527_v3, %v526_v1 }
 0x177   : > { %771 = vpush %v528_v5  ;;  %v539_v6 = vrot.slane %v538_v4, 1 }
 0x179   : > { %v540_v7 = vadd.f32 %v539_v6, %v538_v4 }
 0x17b   : > { %773 = vpush %v540_v7 }
 0x1a8   : > { %s772_s21 = spop %771 }
 0x1a9   : > { %v530_v8 = vstv %s772_s21 }
 0x1aa   : > { %531 = vst [vmem:[%s361_s23] sm:$0x1] %v530_v8 }
 0x1ac   : > { %s774_s12 = spop %773 }
 0x1ad   : > { %v542_v9 = vstv %s774_s12 }
 0x1ae   : > { %543 = vst [vmem:[%s367_s24] sm:$0x1] %v542_v9 }
 0x1af PF: > { %s755_s29 = sshll.u32 %s1105_s22, 4  ;;  %s561_s13 = sshll.u32 %s361_s23, 4  ;;  %s562_s13 = int_to_ptr.vmem [resolvable:$true] %s561_s13 }
 0x1b0   : > { %s559_s30 = scalar_lea.hbm %s1518_s3, %s755_s29  ;;  %s545_s14 = scalar_lea.sflag [#allocation6], %s1407_s0 }
 0x1b1   : > { %s963_s11 = scalar_lea.vmem %s562_s13, 16  ;;  %s1129_s28 = smov [#allocation10]  }
 0x1b2   : > { %p964_p10 = scmp.ne.s32.totalorder %s562_s13, %s963_s11  ;;  %s967_s27 = sshll.u32 %s1129_s28, 4  ;;  %s968_s27 = int_to_ptr.vmem [resolvable:$false] %s967_s27 }
 0x1b3   : > { %s969_s9 = scalar_lea.vmem %s968_s27, 32  ;;  %p970_p12 = scmp.lt.s32.totalorder %s562_s13, %s968_s27 }
 0x1b4   : > { %p965_p3 = pnand %p964_p10, %p1253_p13  ;;  %p971_p0 = scmp.lt.s32.totalorder %s969_s9, %s963_s11 }
 0x1b6   : > { %p966_p11 = pneg %p965_p3  ;;  %p972_p7 = por %p971_p0, %p970_p12 }
 0x1b8   : > { %p973_p1 = pnand %p972_p7, %p966_p11 }
 0x1ba   : > { %976 = shalt.err (!%p973_p1)
}
 0x1bb   : > { %s977_s10 = scalar_lea.hbm %s559_s30, 16  ;;  %s981_s26 = scalar_lea.hbm %s1518_s3, 32 }
 0x1bc   : > { %p978_p2 = scmp.ne.s32.totalorder %s559_s30, %s977_s10  ;;  %p982_p8 = scmp.lt.s32.totalorder %s559_s30, %s1518_s3 }
 0x1bd   : > { %p983_p6 = scmp.lt.s32.totalorder %s981_s26, %s977_s10 }
 0x1be   : > { %p979_p4 = pnand %p978_p2, %p1253_p13 }
 0x1bf   : > { %p984_p9 = por %p983_p6, %p982_p8 }
 0x1c0   : > { %p980_p5 = pneg %p979_p4 }
 0x1c2   : > { %p985_p10 = pnand %p984_p9, %p980_p5 }
 0x1c4   : > { %988 = shalt.err (!%p985_p10)
}
 0x1c5   : > { %778 = dma.vmem_to_hbm [thread:$0]  (%p1253_p13), %s562_s13, 16, %s559_s30, %s545_s14  }
 0x1c6   : > { %s572_s7 = scalar_lea.hbm %s1519_s4, %s755_s29  ;;  %s574_s11 = sshll.u32 %s367_s24, 4  ;;  %s575_s11 = int_to_ptr.vmem [resolvable:$true] %s574_s11 }
 0x1c7   : > { %s549_s28 = scalar_lea.sflag [#allocation12], %s1407_s0  ;;  %s989_s27 = scalar_lea.vmem %s575_s11, 16 }
 0x1c8   : > { %p990_p3 = scmp.ne.s32.totalorder %s575_s11, %s989_s27  ;;  %s1130_s9 = smov [#allocation11]  }
 0x1c9   : > { %s993_s10 = sshll.u32 %s1130_s9, 4  ;;  %s994_s10 = int_to_ptr.vmem [resolvable:$false] %s993_s10 }
 0x1ca   : > { %p991_p11 = pnand %p990_p3, %p1253_p13  ;;  %s995_s5 = scalar_lea.vmem %s994_s10, 32 }
 0x1cb   : > { %p996_p0 = scmp.lt.s32.totalorder %s575_s11, %s994_s10  ;;  %p997_p7 = scmp.lt.s32.totalorder %s995_s5, %s989_s27 }
 0x1cc   : > { %p992_p12 = pneg %p991_p11 }
 0x1cd   : > { %p998_p1 = por %p997_p7, %p996_p0 }
 0x1cf   : > { %p999_p2 = pnand %p998_p1, %p992_p12 }
 0x1d1   : > { %1002 = shalt.err (!%p999_p2)
}
 0x1d2   : > { %s1003_s22 = scalar_lea.hbm %s572_s7, 16  ;;  %s1007_s29 = scalar_lea.hbm %s1519_s4, 32 }
 0x1d3   : > { %p1004_p4 = scmp.ne.s32.totalorder %s572_s7, %s1003_s22  ;;  %p1008_p6 = scmp.lt.s32.totalorder %s572_s7, %s1519_s4 }
 0x1d4   : > { %p1009_p9 = scmp.lt.s32.totalorder %s1007_s29, %s1003_s22 }
 0x1d5   : > { %p1005_p5 = pnand %p1004_p4, %p1253_p13 }
 0x1d6   : > { %p1010_p10 = por %p1009_p9, %p1008_p6 }
 0x1d7   : > { %p1006_p8 = pneg %p1005_p5 }
 0x1d9   : > { %p1011_p3 = pnand %p1010_p10, %p1006_p8 }
 0x1db   : > { %1014 = shalt.err (!%p1011_p3)
}
 0x1dc   : > { %779 = dma.vmem_to_hbm [thread:$0]  (%p1253_p13), %s575_s11, 16, %s572_s7, %s549_s28  }
 0x1dd PF: > { %p789_p11 = scmp.ge.s32.totalorder %s1117_s25, 2  ;;  %s586_s14 = sand.u32 1, %s1077_s15  }
 0x1de   : > { %p1538_p12 = scmp.ne.s32.totalorder %s1536_s8, 0  ;;  %s587_s6 = scalar_lea.sflag [#allocation6], %s586_s14 }
 0x1e0   : > { %p783_p0 = pnand %p789_p11, %p1538_p12 }
 0x1e2   : > { %p784_p7 = pneg %p783_p0 }
 0x1e4   : > { %1068 = dma.done.wait (%p784_p7), %s587_s6, 16  }
 0x1e5   : > { %1070 = vsyncadd (%p784_p7), %s587_s6, 4294967280  ;;  %s595_s26 = scalar_lea.sflag [#allocation12], %s586_s14 }
 0x1e6   : > { %1072 = dma.done.wait (%p784_p7), %s595_s26, 16  }
 0x1e7   : > { %1074 = vsyncadd (%p784_p7), %s595_s26, 4294967280  ;;  %s27_s25 = sadd.s32 1, %s1117_s25   ;;  %s1539_s18 = sld [smem:[#allocation17_spill]] }
 0x1e8   : > { %p24_p1 = scmp.ge.s32.totalorder %s27_s25, 12   ;;  %s1540_s17 = sld [smem:[#allocation22_spill]] }
 0x1e9   : > { %s1541_s23 = sld [smem:[#allocation23_spill]]  ;;  %s1546_s15 = smov %s1081_s16 }
 0x1ea   : > { %s1542_s21 = sld [smem:[#allocation18_spill]] }
 0x1eb   : > { %s1543_s22 = sld [smem:[#allocation19_spill]] }
 0x1ec   : > { %s1544_s8 = sld [smem:[#allocation20_spill]] }
 0x1ed   : > { %s1545_s24 = sld [smem:[#allocation21_spill]]  ;;  %s1547_s16 = smov %s1539_s18 }
 0x1ee   : > { %s1548_s18 = smov %s1093_s19  ;;  %s1549_s19 = smov %s1097_s20 }
 0x1ef   : > { %s1550_s20 = smov %s1541_s23  ;;  %26 = sbr.rel (!%p24_p1) target bundleno = 15 (0xf), region = 134 }
 0x1f2   : > { %s1551_s23 = smov %s1544_s8 }
 0x1f4   :  { %599 = vsyncpa [#allocation5], 1 }
 0x1f5   :  { %601 = vsyncpa [#allocation5 + $0x1], 1 }
 0x1f6   :  { %602 = vsyncpa [#allocation8], 1 }
 0x1f7   :  { %604 = vsyncpa [#allocation8 + $0x1], 1 }
 0x1f8   :  { %605 = vsyncpa [#allocation6], 1 }
 0x1f9   :  { %607 = vsyncpa [#allocation6 + $0x1], 1 }
 0x1fa   :  { %608 = vsyncpa [#allocation12], 1 }
 0x1fb   :  { %610 = vsyncpa [#allocation12 + $0x1], 1 }

</bundles_post_ra>
